<compile_context>
chip_gen: v7x
topology: tpu7x:2x2x1
jax: 0.10.0
libtpu: 0.0.40
codegen_flags: <defaults>
</compile_context>

<pallas_src>
import jax
import jax.numpy as jnp
from jax.experimental import pallas as pl
from jax.experimental.pallas import tpu as pltpu

EPS = 1e-5
LANE = 128


def _round_up(x, m):
    return (x + m - 1) // m * m


def _pad_axis(a, axis, target):
    pad = target - a.shape[axis]
    if pad == 0:
        return a
    widths = [(0, 0)] * a.ndim
    widths[axis] = (0, pad)
    return jnp.pad(a, widths)


# ----------------------------- Pallas kernels --------------------------------

def _conv1_kernel(adj_ref, x_ref, w1_ref, b1_ref, h1_ref, stats1_ref):
    """Per graph g: h1 = A_g @ (X_g W1) + b1; emit h1 and sum / sum-of-squares."""
    adj = adj_ref[...].astype(jnp.float32)               # (n, n)  bf16 -> f32
    xw = jnp.dot(x_ref[...], w1_ref[...],
                 preferred_element_type=jnp.float32)     # (n, Hp)
    h = jnp.dot(adj, xw, preferred_element_type=jnp.float32) + b1_ref[...]
    h1_ref[...] = h
    # one-pass BatchNorm statistics (partial, per graph)
    stats1_ref[0:1, :] = jnp.sum(h, axis=0, keepdims=True)
    stats1_ref[1:2, :] = jnp.sum(h * h, axis=0, keepdims=True)


def _bn_relu_conv2_kernel(adj_ref, h1_ref, norm1_ref, w2_ref, b2_ref,
                          stats2_ref):
    """Per graph g: h = relu(h1*scale1 + shift1); h2 = A_g @ (h W2) + b2;
    emit per-graph sum / sum-of-squares of h2 (enough for BN2 + SumPooling)."""
    adj = adj_ref[...].astype(jnp.float32)               # (n, n)
    scale = norm1_ref[0:1, :]                            # gamma1 * rsqrt(var1+eps)
    shift = norm1_ref[1:2, :]                            # beta1 - mu1 * scale
    h = jnp.maximum(h1_ref[...] * scale + shift, 0.0)    # folded BN1 + ReLU
    hw = jnp.dot(h, w2_ref[...], preferred_element_type=jnp.float32)
    h2 = jnp.dot(adj, hw, preferred_element_type=jnp.float32) + b2_ref[...]
    stats2_ref[0:1, :] = jnp.sum(h2, axis=0, keepdims=True)
    stats2_ref[1:2, :] = jnp.sum(h2 * h2, axis=0, keepdims=True)


# ------------------------------- wrapper --------------------------------------

@jax.jit
def molecular_update(adj_blocks, x, params):
    """Forward pass of MolecularUpdateModule.

    adj_blocks : [G, n, n] per-graph normalized adjacency D^-1/2 (A+I) D^-1/2
                 (the block-diagonal structure of the batched DGL graph).
    x          : [G*n, atom_dim] node features, graphs contiguous.
    params     : (w1, b1, g1, be1, w2, b2, g2, be2).
    Returns [G, emb_dim] graph embeddings (squeezed, as in the torch module).
    """
    w1, b1, g1, be1, w2, b2, g2, be2 = params
    G, n, _ = adj_blocks.shape
    N = G * n
    atom_dim, hidden_dim = w1.shape
    emb_dim = w2.shape[1]
    assert n % 8 == 0, "nodes_per_graph must be a multiple of 8"

    Fp = _round_up(atom_dim, LANE)
    Hp = _round_up(hidden_dim, LANE)
    Ep = _round_up(emb_dim, LANE)

    # lane-dense zero-padded operands; padded feature columns stay exactly
    # zero through conv / BN / ReLU so no masking is required.
    xp = _pad_axis(x.astype(jnp.float32), 1, Fp)
    w1p = _pad_axis(_pad_axis(w1, 0, Fp), 1, Hp)
    w2p = _pad_axis(_pad_axis(w2, 0, Hp), 1, Ep)
    b1p = _pad_axis(b1.reshape(1, -1), 1, Hp)
    b2p = _pad_axis(b2.reshape(1, -1), 1, Ep)
    g1p = _pad_axis(g1.reshape(1, -1), 1, Hp)
    be1p = _pad_axis(be1.reshape(1, -1), 1, Hp)
    g2p = _pad_axis(g2.reshape(1, -1), 1, Ep)
    be2p = _pad_axis(be2.reshape(1, -1), 1, Ep)

    adj_bf16 = adj_blocks.astype(jnp.bfloat16)   # halve adjacency HBM/VMEM bytes

    cparams = pltpu.CompilerParams(
        dimension_semantics=("parallel",),        # graphs are independent
        vmem_limit_bytes=48 * 1024 * 1024,
    )

    # ---- pass 1: conv1 per graph + partial BN1 statistics -------------------
    h1, stats1 = pl.pallas_call(
        _conv1_kernel,
        grid=(G,),
        in_specs=[
            pl.BlockSpec((None, n, n), lambda g: (g, 0, 0)),   # adj block
            pl.BlockSpec((n, Fp), lambda g: (g, 0)),           # x block
            pl.BlockSpec((Fp, Hp), lambda g: (0, 0)),          # w1 (resident)
            pl.BlockSpec((1, Hp), lambda g: (0, 0)),           # b1 (resident)
        ],
        out_specs=[
            pl.BlockSpec((n, Hp), lambda g: (g, 0)),           # h1
            pl.BlockSpec((None, 2, Hp), lambda g: (g, 0, 0)),  # per-graph stats
        ],
        out_shape=[
            jax.ShapeDtypeStruct((N, Hp), jnp.float32),
            jax.ShapeDtypeStruct((G, 2, Hp), jnp.float32),
        ],
        compiler_params=cparams,
    )(adj_bf16, xp, w1p, b1p)

    # ---- global BN1 statistics (tiny [2, Hp] cross-graph reduction) ----------
    tot1 = jnp.sum(stats1, axis=0)                       # (2, Hp)
    mu1 = tot1[0] / N
    var1 = jnp.maximum(tot1[1] / N - mu1 * mu1, 0.0)
    scale1 = g1p[0] * jax.lax.rsqrt(var1 + EPS)
    shift1 = be1p[0] - mu1 * scale1
    norm1 = jnp.stack([scale1, shift1], axis=0)          # (2, Hp)

    # ---- pass 2: BN1 + ReLU + conv2 per graph + partial BN2 statistics ------
    stats2 = pl.pallas_call(
        _bn_relu_conv2_kernel,
        grid=(G,),
        in_specs=[
            pl.BlockSpec((None, n, n), lambda g: (g, 0, 0)),   # adj block
            pl.BlockSpec((n, Hp), lambda g: (g, 0)),           # h1 block
            pl.BlockSpec((2, Hp), lambda g: (0, 0)),           # folded BN1
            pl.BlockSpec((Hp, Ep), lambda g: (0, 0)),          # w2 (resident)
            pl.BlockSpec((1, Ep), lambda g: (0, 0)),           # b2 (resident)
        ],
        out_specs=pl.BlockSpec((None, 2, Ep), lambda g: (g, 0, 0)),
        out_shape=jax.ShapeDtypeStruct((G, 2, Ep), jnp.float32),
        compiler_params=cparams,
    )(adj_bf16, h1, norm1, w2p, b2p)

    # ---- BN2 + SumPooling -----------------------------------------------------
    # BN2 is a per-feature affine map and SumPooling is linear:
    #   sum_nodes(BN2(h2)) == scale2 * sum_nodes(h2) + n * shift2
    # so the graph embedding comes straight from the per-graph sums.
    tot2 = jnp.sum(stats2, axis=0)                       # (2, Ep)
    mu2 = tot2[0] / N
    var2 = jnp.maximum(tot2[1] / N - mu2 * mu2, 0.0)
    scale2 = g2p[0] * jax.lax.rsqrt(var2 + EPS)
    shift2 = be2p[0] - mu2 * scale2
    graph_sums = stats2[:, 0, :]                         # (G, Ep)
    out = graph_sums * scale2[None, :] + n * shift2[None, :]
    return jnp.squeeze(out[:, :emb_dim])


# ------------------------------ test harness ----------------------------------

def _build_graph_blocks(key, num_graphs, nodes_per_graph):
    """Per-graph random symmetric adjacency with self loops, DGL 'both' norm."""
    n = nodes_per_graph
    a = (jax.random.uniform(key, (num_graphs, n, n)) < 0.3).astype(jnp.float32)
    a = jnp.maximum(a, jnp.transpose(a, (0, 2, 1)))             # symmetric
    a = jnp.maximum(a, jnp.eye(n, dtype=jnp.float32)[None])     # self loops
    deg = jnp.sum(a, axis=-1)
    dinv = 1.0 / jnp.sqrt(deg)
    return a * dinv[:, :, None] * dinv[:, None, :]              # D^-1/2 A D^-1/2


def _xavier_uniform(key, fan_in, fan_out):
    limit = jnp.sqrt(6.0 / (fan_in + fan_out))
    return jax.random.uniform(key, (fan_in, fan_out), jnp.float32, -limit, limit)


if __name__ == "__main__":
    num_graphs, nodes_per_graph = 4, 16
    atom_dim, hidden_dim, emb_dim = 16, 32, 32
    N = num_graphs * nodes_per_graph

    key = jax.random.PRNGKey(0)
    kg, kx, kw1, kw2 = jax.random.split(key, 4)

    adj_blocks = _build_graph_blocks(kg, num_graphs, nodes_per_graph)
    x = jax.random.normal(kx, (N, atom_dim), jnp.float32)

    # GraphConv weights: xavier-uniform, bias 0; BatchNorm: gamma=1, beta=0
    w1 = _xavier_uniform(kw1, atom_dim, hidden_dim)
    b1 = jnp.zeros((hidden_dim,), jnp.float32)
    g1 = jnp.ones((hidden_dim,), jnp.float32)
    be1 = jnp.zeros((hidden_dim,), jnp.float32)
    w2 = _xavier_uniform(kw2, hidden_dim, emb_dim)
    b2 = jnp.zeros((emb_dim,), jnp.float32)
    g2 = jnp.ones((emb_dim,), jnp.float32)
    be2 = jnp.zeros((emb_dim,), jnp.float32)
    params = (w1, b1, g1, be1, w2, b2, g2, be2)

    out = molecular_update(adj_blocks, x, params)
    out = jax.block_until_ready(out)

    # pure-JAX float32 reference (uses the same bf16-rounded adjacency values
    # that the kernel consumes, so the comparison is apples-to-apples).
    def ref():
        adj_f = adj_blocks.astype(jnp.bfloat16).astype(jnp.float32)
        xg = x.reshape(num_graphs, nodes_per_graph, atom_dim)
        h = jnp.einsum("gij,gjf->gif", adj_f, xg @ w1) + b1
        h = h.reshape(N, hidden_dim)
        mu, var = h.mean(0), h.var(0)
        h = (h - mu) / jnp.sqrt(var + EPS) * g1 + be1
        h = jnp.maximum(h, 0.0)
        hg = h.reshape(num_graphs, nodes_per_graph, hidden_dim)
        h2 = jnp.einsum("gij,gjf->gif", adj_f, hg @ w2) + b2
        h2 = h2.reshape(N, emb_dim)
        mu2, var2 = h2.mean(0), h2.var(0)
        h2 = (h2 - mu2) / jnp.sqrt(var2 + EPS) * g2 + be2
        return h2.reshape(num_graphs, nodes_per_graph, emb_dim).sum(1)

    expect = ref()
    assert out.shape == (num_graphs, emb_dim)
    assert jnp.allclose(out, expect, atol=2e-3, rtol=2e-3), \
        float(jnp.max(jnp.abs(out - expect)))
    print("KERNEL_OK")
</pallas_src>

<mosaic_0001>
module attributes {stable_mosaic.version = 11 : i64} {
  func.func @_conv1_kernel(%arg0: i32, %arg1: memref<1x16x16xbf16, #tpu.memory_space<vmem>>, %arg2: memref<16x128xf32, #tpu.memory_space<vmem>>, %arg3: memref<128x128xf32, #tpu.memory_space<vmem>>, %arg4: memref<1x128xf32, #tpu.memory_space<vmem>>, %arg5: memref<16x128xf32, #tpu.memory_space<vmem>>, %arg6: memref<1x2x128xf32, #tpu.memory_space<vmem>>) attributes {dimension_semantics = [#tpu.dimension_semantics<parallel>], iteration_bounds = array<i64: 4>, scalar_prefetch = 0 : i64, scratch_operands = 0 : i64, tpu.core_type = #tpu.core_type<tc>, window_params = [{transform_indices = @transform_0, window_bounds = array<i64: 1, 16, 16>}, {transform_indices = @transform_1, window_bounds = array<i64: 16, 128>}, {pipeline_mode = #tpu.pipeline_mode<synchronous>, transform_indices = @transform_2, window_bounds = array<i64: 128, 128>}, {pipeline_mode = #tpu.pipeline_mode<synchronous>, transform_indices = @transform_3, window_bounds = array<i64: 1, 128>}, {transform_indices = @transform_4, window_bounds = array<i64: 16, 128>}, {transform_indices = @transform_5, window_bounds = array<i64: 1, 2, 128>}]} {
    %c0 = arith.constant 0 : index
    %c0_0 = arith.constant 0 : index
    %c0_1 = arith.constant 0 : index
    %0 = vector.load %arg1[%c0, %c0_0, %c0_1] : memref<1x16x16xbf16, #tpu.memory_space<vmem>>, vector<1x16x16xbf16>
    %1 = vector.shape_cast %0 : vector<1x16x16xbf16> to vector<16x16xbf16>
    %2 = arith.extf %1 : vector<16x16xbf16> to vector<16x16xf32>
    %c0_2 = arith.constant 0 : index
    %c0_3 = arith.constant 0 : index
    %3 = vector.load %arg2[%c0_2, %c0_3] : memref<16x128xf32, #tpu.memory_space<vmem>>, vector<16x128xf32>
    %c0_4 = arith.constant 0 : index
    %c0_5 = arith.constant 0 : index
    %4 = vector.load %arg3[%c0_4, %c0_5] : memref<128x128xf32, #tpu.memory_space<vmem>>, vector<128x128xf32>
    %cst = arith.constant dense<0.000000e+00> : vector<16x128xf32>
    %5 = tpu.matmul %3, %4, %cst {dimension_numbers = #tpu.dot_dimension_numbers<[1], [0], [0], [1], [0, 0, 1, 1], [], []>} : vector<16x128xf32>, vector<128x128xf32>, vector<16x128xf32> -> vector<16x128xf32>
    %cst_6 = arith.constant dense<0.000000e+00> : vector<16x128xf32>
    %6 = tpu.matmul %2, %5, %cst_6 {dimension_numbers = #tpu.dot_dimension_numbers<[1], [0], [0], [1], [0, 0, 1, 1], [], []>} : vector<16x16xf32>, vector<16x128xf32>, vector<16x128xf32> -> vector<16x128xf32>
    %c0_7 = arith.constant 0 : index
    %c0_8 = arith.constant 0 : index
    %7 = vector.load %arg4[%c0_7, %c0_8] : memref<1x128xf32, #tpu.memory_space<vmem>>, vector<1x128xf32>
    %8 = vector.broadcast %7 : vector<1x128xf32> to vector<16x128xf32>
    %9 = arith.addf %6, %8 : vector<16x128xf32>
    %c0_9 = arith.constant 0 : index
    %c0_10 = arith.constant 0 : index
    %10 = vector.load %arg5[%c0_9, %c0_10] : memref<16x128xf32, #tpu.memory_space<vmem>>, vector<16x128xf32>
    tpu.vector_store %arg5[%c0_9, %c0_10], %9 {strides = array<i32>} : memref<16x128xf32, #tpu.memory_space<vmem>>, vector<16x128xf32>,
    %cst_11 = arith.constant dense<0.000000e+00> : vector<128xf32>
    %11 = vector.multi_reduction <add>, %9, %cst_11 [0] : vector<16x128xf32> to vector<128xf32>
    %12 = vector.shape_cast %11 : vector<128xf32> to vector<1x128xf32>
    %c0_12 = arith.constant 0 : index
    %c0_13 = arith.constant 0 : index
    %c0_14 = arith.constant 0 : index
    %13 = vector.load %arg6[%c0_12, %c0_13, %c0_14] : memref<1x2x128xf32, #tpu.memory_space<vmem>>, vector<1x1x128xf32>
    %14 = vector.shape_cast %13 : vector<1x1x128xf32> to vector<1x128xf32>
    %15 = vector.shape_cast %12 : vector<1x128xf32> to vector<1x1x128xf32>
    tpu.vector_store %arg6[%c0_12, %c0_13, %c0_14], %15 {strides = array<i32>} : memref<1x2x128xf32, #tpu.memory_space<vmem>>, vector<1x1x128xf32>,
    %16 = arith.mulf %9, %9 : vector<16x128xf32>
    %cst_15 = arith.constant dense<0.000000e+00> : vector<128xf32>
    %17 = vector.multi_reduction <add>, %16, %cst_15 [0] : vector<16x128xf32> to vector<128xf32>
    %18 = vector.shape_cast %17 : vector<128xf32> to vector<1x128xf32>
    %c0_16 = arith.constant 0 : index
    %c1 = arith.constant 1 : index
    %c0_17 = arith.constant 0 : index
    %19 = vector.load %arg6[%c0_16, %c1, %c0_17] : memref<1x2x128xf32, #tpu.memory_space<vmem>>, vector<1x1x128xf32>
    %20 = vector.shape_cast %19 : vector<1x1x128xf32> to vector<1x128xf32>
    %21 = vector.shape_cast %18 : vector<1x128xf32> to vector<1x1x128xf32>
    tpu.vector_store %arg6[%c0_16, %c1, %c0_17], %21 {strides = array<i32>} : memref<1x2x128xf32, #tpu.memory_space<vmem>>, vector<1x1x128xf32>,
    return
  }
  func.func @transform_0(%arg0: i32) -> (i32, i32, i32) {
    %c0_i32 = arith.constant 0 : i32
    %c0_i32_0 = arith.constant 0 : i32
    %c0_i32_1 = arith.constant 0 : i32
    return %arg0, %c0_i32, %c0_i32_0 : i32, i32, i32
  }
  func.func @transform_1(%arg0: i32) -> (i32, i32) {
    %c0_i32 = arith.constant 0 : i32
    %c0_i32_0 = arith.constant 0 : i32
    return %arg0, %c0_i32 : i32, i32
  }
  func.func @transform_2(%arg0: i32) -> (i32, i32) {
    %c0_i32 = arith.constant 0 : i32
    %c0_i32_0 = arith.constant 0 : i32
    %c0_i32_1 = arith.constant 0 : i32
    return %c0_i32, %c0_i32_0 : i32, i32
  }
  func.func @transform_3(%arg0: i32) -> (i32, i32) {
    %c0_i32 = arith.constant 0 : i32
    %c0_i32_0 = arith.constant 0 : i32
    %c0_i32_1 = arith.constant 0 : i32
    return %c0_i32, %c0_i32_0 : i32, i32
  }
  func.func @transform_4(%arg0: i32) -> (i32, i32) {
    %c0_i32 = arith.constant 0 : i32
    %c0_i32_0 = arith.constant 0 : i32
    return %arg0, %c0_i32 : i32, i32
  }
  func.func @transform_5(%arg0: i32) -> (i32, i32, i32) {
    %c0_i32 = arith.constant 0 : i32
    %c0_i32_0 = arith.constant 0 : i32
    %c0_i32_1 = arith.constant 0 : i32
    return %arg0, %c0_i32, %c0_i32_0 : i32, i32, i32
  }
}

module attributes {stable_mosaic.version = 11 : i64} {
  func.func @_bn_relu_conv2_kernel(%arg0: i32, %arg1: memref<1x16x16xbf16, #tpu.memory_space<vmem>>, %arg2: memref<16x128xf32, #tpu.memory_space<vmem>>, %arg3: memref<2x128xf32, #tpu.memory_space<vmem>>, %arg4: memref<128x128xf32, #tpu.memory_space<vmem>>, %arg5: memref<1x128xf32, #tpu.memory_space<vmem>>, %arg6: memref<1x2x128xf32, #tpu.memory_space<vmem>>) attributes {dimension_semantics = [#tpu.dimension_semantics<parallel>], iteration_bounds = array<i64: 4>, scalar_prefetch = 0 : i64, scratch_operands = 0 : i64, tpu.core_type = #tpu.core_type<tc>, window_params = [{transform_indices = @transform_0, window_bounds = array<i64: 1, 16, 16>}, {transform_indices = @transform_1, window_bounds = array<i64: 16, 128>}, {pipeline_mode = #tpu.pipeline_mode<synchronous>, transform_indices = @transform_2, window_bounds = array<i64: 2, 128>}, {pipeline_mode = #tpu.pipeline_mode<synchronous>, transform_indices = @transform_3, window_bounds = array<i64: 128, 128>}, {pipeline_mode = #tpu.pipeline_mode<synchronous>, transform_indices = @transform_4, window_bounds = array<i64: 1, 128>}, {transform_indices = @transform_5, window_bounds = array<i64: 1, 2, 128>}]} {
    %c0 = arith.constant 0 : index
    %c0_0 = arith.constant 0 : index
    %c0_1 = arith.constant 0 : index
    %0 = vector.load %arg1[%c0, %c0_0, %c0_1] : memref<1x16x16xbf16, #tpu.memory_space<vmem>>, vector<1x16x16xbf16>
    %1 = vector.shape_cast %0 : vector<1x16x16xbf16> to vector<16x16xbf16>
    %2 = arith.extf %1 : vector<16x16xbf16> to vector<16x16xf32>
    %c0_2 = arith.constant 0 : index
    %c0_3 = arith.constant 0 : index
    %3 = vector.load %arg3[%c0_2, %c0_3] : memref<2x128xf32, #tpu.memory_space<vmem>>, vector<1x128xf32>
    %c1 = arith.constant 1 : index
    %c0_4 = arith.constant 0 : index
    %4 = vector.load %arg3[%c1, %c0_4] : memref<2x128xf32, #tpu.memory_space<vmem>>, vector<1x128xf32>
    %c0_5 = arith.constant 0 : index
    %c0_6 = arith.constant 0 : index
    %5 = vector.load %arg2[%c0_5, %c0_6] : memref<16x128xf32, #tpu.memory_space<vmem>>, vector<16x128xf32>
    %6 = vector.broadcast %3 : vector<1x128xf32> to vector<16x128xf32>
    %7 = arith.mulf %5, %6 : vector<16x128xf32>
    %8 = vector.broadcast %4 : vector<1x128xf32> to vector<16x128xf32>
    %9 = arith.addf %7, %8 : vector<16x128xf32>
    %cst = arith.constant 0.000000e+00 : f32
    %10 = vector.broadcast %cst : f32 to vector<16x128xf32>
    %11 = arith.maximumf %9, %10 : vector<16x128xf32>
    %c0_7 = arith.constant 0 : index
    %c0_8 = arith.constant 0 : index
    %12 = vector.load %arg4[%c0_7, %c0_8] : memref<128x128xf32, #tpu.memory_space<vmem>>, vector<128x128xf32>
    %cst_9 = arith.constant dense<0.000000e+00> : vector<16x128xf32>
    %13 = tpu.matmul %11, %12, %cst_9 {dimension_numbers = #tpu.dot_dimension_numbers<[1], [0], [0], [1], [0, 0, 1, 1], [], []>} : vector<16x128xf32>, vector<128x128xf32>, vector<16x128xf32> -> vector<16x128xf32>
    %cst_10 = arith.constant dense<0.000000e+00> : vector<16x128xf32>
    %14 = tpu.matmul %2, %13, %cst_10 {dimension_numbers = #tpu.dot_dimension_numbers<[1], [0], [0], [1], [0, 0, 1, 1], [], []>} : vector<16x16xf32>, vector<16x128xf32>, vector<16x128xf32> -> vector<16x128xf32>
    %c0_11 = arith.constant 0 : index
    %c0_12 = arith.constant 0 : index
    %15 = vector.load %arg5[%c0_11, %c0_12] : memref<1x128xf32, #tpu.memory_space<vmem>>, vector<1x128xf32>
    %16 = vector.broadcast %15 : vector<1x128xf32> to vector<16x128xf32>
    %17 = arith.addf %14, %16 : vector<16x128xf32>
    %cst_13 = arith.constant dense<0.000000e+00> : vector<128xf32>
    %18 = vector.multi_reduction <add>, %17, %cst_13 [0] : vector<16x128xf32> to vector<128xf32>
    %19 = vector.shape_cast %18 : vector<128xf32> to vector<1x128xf32>
    %c0_14 = arith.constant 0 : index
    %c0_15 = arith.constant 0 : index
    %c0_16 = arith.constant 0 : index
    %20 = vector.load %arg6[%c0_14, %c0_15, %c0_16] : memref<1x2x128xf32, #tpu.memory_space<vmem>>, vector<1x1x128xf32>
    %21 = vector.shape_cast %20 : vector<1x1x128xf32> to vector<1x128xf32>
    %22 = vector.shape_cast %19 : vector<1x128xf32> to vector<1x1x128xf32>
    tpu.vector_store %arg6[%c0_14, %c0_15, %c0_16], %22 {strides = array<i32>} : memref<1x2x128xf32, #tpu.memory_space<vmem>>, vector<1x1x128xf32>,
    %23 = arith.mulf %17, %17 : vector<16x128xf32>
    %cst_17 = arith.constant dense<0.000000e+00> : vector<128xf32>
    %24 = vector.multi_reduction <add>, %23, %cst_17 [0] : vector<16x128xf32> to vector<128xf32>
    %25 = vector.shape_cast %24 : vector<128xf32> to vector<1x128xf32>
    %c0_18 = arith.constant 0 : index
    %c1_19 = arith.constant 1 : index
    %c0_20 = arith.constant 0 : index
    %26 = vector.load %arg6[%c0_18, %c1_19, %c0_20] : memref<1x2x128xf32, #tpu.memory_space<vmem>>, vector<1x1x128xf32>
    %27 = vector.shape_cast %26 : vector<1x1x128xf32> to vector<1x128xf32>
    %28 = vector.shape_cast %25 : vector<1x128xf32> to vector<1x1x128xf32>
    tpu.vector_store %arg6[%c0_18, %c1_19, %c0_20], %28 {strides = array<i32>} : memref<1x2x128xf32, #tpu.memory_space<vmem>>, vector<1x1x128xf32>,
    return
  }
  func.func @transform_0(%arg0: i32) -> (i32, i32, i32) {
    %c0_i32 = arith.constant 0 : i32
    %c0_i32_0 = arith.constant 0 : i32
    %c0_i32_1 = arith.constant 0 : i32
    return %arg0, %c0_i32, %c0_i32_0 : i32, i32, i32
  }
  func.func @transform_1(%arg0: i32) -> (i32, i32) {
    %c0_i32 = arith.constant 0 : i32
    %c0_i32_0 = arith.constant 0 : i32
    return %arg0, %c0_i32 : i32, i32
  }
  func.func @transform_2(%arg0: i32) -> (i32, i32) {
    %c0_i32 = arith.constant 0 : i32
    %c0_i32_0 = arith.constant 0 : i32
    %c0_i32_1 = arith.constant 0 : i32
    return %c0_i32, %c0_i32_0 : i32, i32
  }
  func.func @transform_3(%arg0: i32) -> (i32, i32) {
    %c0_i32 = arith.constant 0 : i32
    %c0_i32_0 = arith.constant 0 : i32
    %c0_i32_1 = arith.constant 0 : i32
    return %c0_i32, %c0_i32_0 : i32, i32
  }
  func.func @transform_4(%arg0: i32) -> (i32, i32) {
    %c0_i32 = arith.constant 0 : i32
    %c0_i32_0 = arith.constant 0 : i32
    %c0_i32_1 = arith.constant 0 : i32
    return %c0_i32, %c0_i32_0 : i32, i32
  }
  func.func @transform_5(%arg0: i32) -> (i32, i32, i32) {
    %c0_i32 = arith.constant 0 : i32
    %c0_i32_0 = arith.constant 0 : i32
    %c0_i32_1 = arith.constant 0 : i32
    return %arg0, %c0_i32, %c0_i32_0 : i32, i32, i32
  }
}

</mosaic_0001>

<bundles_post_ra>
// kernel: molecular_update.3
= control target key start
LH: loop header
LB: loop body
LE: loop exit
PB: predicated region body
PF: predicated region fallthrough
CT: control target
= control target key end

     0   :  { %s698_s18 = smov 0   ;;  %s784_s0 = inlined_call_operand.vmem [shape: bf16[4,16,16], index: 0, kind: input, shape index: {}]   ;;  %s785_s1 = inlined_call_operand.vmem [shape: f32[64,128], index: 1, kind: input, shape index: {}]   ;;  %s786_s2 = inlined_call_operand.vmem [shape: f32[2,128], index: 2, kind: input, shape index: {}]   ;;  %s787_s3 = inlined_call_operand.vmem [shape: f32[128,128], index: 3, kind: input, shape index: {}]   ;;  %s788_s4 = inlined_call_operand.vmem [shape: f32[1,128], index: 4, kind: input, shape index: {}]   ;;  %s789_s5 = inlined_call_operand.vmem [shape: f32[4,2,128], index: 5, kind: output, shape index: {}]  }
   0x1 LB: > { %s704_s19 = sadd.s32 4294967295, %s666_s18   ;;  %p534_p0 = scmp.ge.s32.totalorder %s666_s18, 1  ;;  %s666_s18 = sphi %s698_s18, %s15_s18  }
   0x2   : > { %p198_p1 = scmp.lt.s32.totalorder %s666_s18, 5 }
   0x4   : > { %p199_p2 = pnand %p534_p0, %p198_p1 }
   0x5   : > { %v267_v0 = vld [vmem:[%s787_s3] sm:$0xff] (!%p199_p2)  ;;  %v268_v1 = vld [vmem:[%s787_s3 + $0x8] sm:$0xff] (!%p199_p2)  ;;  %v269_v2 = vld [vmem:[%s787_s3 + $0x10] sm:$0xff] (!%p199_p2)  ;;  %s537_s26 = sshll.u32 (!%p199_p2), %s704_s19, 1  ;;  %p230_p4 = scmp.lt.s32.totalorder (!%p199_p2), %s704_s19, 3  ;;  %vm365_vm0 = vcmask (!%p199_p2), 130048  }
   0x6   : > { %202 = sbr.rel (%p199_p2) target bundleno = 491 (0x1eb), region = 40  ;;  %v616_v3 = vpack.c.bf16 (!%p199_p2), %v268_v1, %v267_v0  ;;  %v270_v4 = vld [vmem:[%s787_s3 + $0x18] sm:$0xff] (!%p199_p2)  ;;  %p236_p3 = scmp.lt.s32.totalorder (!%p199_p2), %s537_s26, 7  ;;  %v271_v6 = vld [vmem:[%s787_s3 + $0x20] sm:$0xff] (!%p199_p2)  ;;  %v272_v7 = vld [vmem:[%s787_s3 + $0x28] sm:$0xff] (!%p199_p2) }
   0x7   : > { %v620_v5 = vpack.c.bf16 (!%p199_p2), %v270_v4, %v269_v2  ;;  %v624_v8 = vpack.c.bf16 (!%p199_p2), %v272_v7, %v271_v6  ;;  %v540_v9 = vld [vmem:[%s786_s2] ss:$0 sm:$0xff] (!%p199_p2)  ;;  %v273_v10 = vld [vmem:[%s787_s3 + $0x30] sm:$0xff] (!%p199_p2)  ;;  %v274_v11 = vld [vmem:[%s787_s3 + $0x38] sm:$0xff] (!%p199_p2) }
   0x8   : > { %617 = vmatprep.subr.bf16.mxu0 (!%p199_p2), %v616_v3  ;;  %v541_v12 = vld [vmem:[%s786_s2 + $0x1] ss:$0 sm:$0xff] (!%p199_p2)  ;;  %v628_v15 = vpack.c.bf16 (!%p199_p2), %v274_v11, %v273_v10  ;;  %v276_v17 = vld [vmem:[%s787_s3 + $0x48] sm:$0xff] (!%p199_p2)  ;;  %v277_v21 = vld [vmem:[%s787_s3 + $0x50] sm:$0xff] (!%p199_p2) }
   0x9   : > { %619 = vmatpush3.bf16.msra.mxu0 (!%p199_p2), %v616_v3  ;;  %v275_v16 = vld [vmem:[%s787_s3 + $0x40] sm:$0xff] (!%p199_p2)  ;;  %v278_v22 = vld [vmem:[%s787_s3 + $0x58] sm:$0xff] (!%p199_p2)  ;;  %v280_v25 = vld [vmem:[%s787_s3 + $0x68] sm:$0xff] (!%p199_p2) }
   0xa   : > { %621 = vmatprep.subr.bf16.mxu0 (!%p199_p2), %v620_v5  ;;  %v632_v20 = vpack.c.bf16 (!%p199_p2), %v276_v17, %v275_v16  ;;  %v636_v23 = vpack.c.bf16 (!%p199_p2), %v278_v22, %v277_v21  ;;  %v279_v24 = vld [vmem:[%s787_s3 + $0x60] sm:$0xff] (!%p199_p2)  ;;  %v281_v28 = vld [vmem:[%s787_s3 + $0x70] sm:$0xff] (!%p199_p2)  ;;  %v282_v29 = vld [vmem:[%s787_s3 + $0x78] sm:$0xff] (!%p199_p2) }
   0xb   : > { %v640_v27 = vpack.c.bf16 (!%p199_p2), %v280_v25, %v279_v24  ;;  %v644_v31 = vpack.c.bf16 (!%p199_p2), %v282_v29, %v281_v28  ;;  %v542_v40 = vld [vmem:[%s788_s4] ss:$0 sm:$0xff] (!%p199_p2) }
   0xd   : > { %s791_s26 = smov (!%p236_p3, %s537_s26), 7  ;;  %623 = vmatpush3.bf16.msra.mxu0 %v620_v5  ;;  %s793_s19 = smov (!%p230_p4, %s704_s19), 3 }
   0xe   : > { %s538_s8 = sshll.u32 %s791_s26, 3  ;;  %625 = vmatprep.subr.bf16.mxu0 %v624_v8  ;;  %s547_s13 = sshll.u32 %s793_s19, 3 }
   0xf   : > { %s239_s17 = scalar_lea.vmem %s785_s1, %s538_s8  ;;  %s234_s16 = scalar_lea.vmem %s784_s0, %s547_s13 }
  0x10   : > { %v251_v13 = vld [vmem:[%s239_s17] sm:$0xff]  ;;  %v252_v26 = vld [vmem:[%s239_s17 + $0x8] sm:$0xff]  ;;  %s539_s21 = sshll.u32 %s793_s19, 1 }
  0x11   : > { %v257_v14 = vmul.f32 %v540_v9, %v251_v13  ;;  %627 = vmatpush3.bf16.msra.mxu0 %v624_v8  ;;  %v258_v30 = vmul.f32 %v540_v9, %v252_v26  ;;  %v549_v34 = vld [vmem:[%s234_s16] sm:$0xff]   ;;  %s244_s24 = scalar_lea.vmem %s789_s5, %s539_s21 }
  0x12   : > { %629 = vmatprep.subr.bf16.mxu0 %v628_v15  ;;  %v550_v35 = vunpack.c.l.bf16 %v549_v34  ;;  %v551_v39 = vunpack.c.h.bf16 %v549_v34 }
  0x13   : > { %v263_v18 = vadd.f32 %v541_v12, %v257_v14  ;;  %v264_v32 = vadd.f32 %v541_v12, %v258_v30 }
  0x14   : > { %613 = vmatprep.mubr.msk.f32.mxu1 %vm365_vm0, %v550_v35 }
  0x15   : > { %v265_v19 = vmax.f32 %v263_v18, 0.0  ;;  %631 = vmatpush3.bf16.msra.mxu0 %v628_v15  ;;  %v266_v33 = vmax.f32 %v264_v32, 0.0 }
  0x16   : > { %633 = vmatprep.subr.bf16.mxu0 %v632_v20 }
  0x17   : > { %606 = vmatprep.mubr.f32.mxu0 %v265_v19 }
  0x19   : > { %635 = vmatpush3.bf16.msra.mxu0 %v632_v20 }
  0x1a   : > { %637 = vmatprep.subr.bf16.mxu0 %v636_v23 }
  0x1d   : > { %639 = vmatpush3.bf16.msra.mxu0 %v636_v23 }
  0x1e   : > { %641 = vmatprep.subr.bf16.mxu0 %v640_v27 }
  0x21   : > { %643 = vmatpush3.bf16.msra.mxu0 %v640_v27 }
  0x22   : > { %645 = vmatprep.subr.bf16.mxu0 %v644_v31 }
  0x25   : > { %647 = vmatpush3.bf16.msra.mxu0 %v644_v31 }
  0x28   : > { %607 = vmatmul.mubr.f32.vlgmr.msra.gmra.mrb[0].mxu0 %v266_v33 }
  0xfb   : > { %v608_v36 = vpop.f32.mrb[0].mxu0 }
  0xfc   : > { %v349_v37 = vpop.f32.mrb[1].mxu0 }
  0xfd   : > { %v648_v38 = vpack.c.bf16 %v608_v36, %v349_v37 }
  0xff   : > { %649 = vmatprep.subr.bf16.mxu1 %v648_v38 }
 0x100   : > { %651 = vmatpush3.bf16.msra.mxu1 %v648_v38 }
 0x103   : > { %614 = vmatmul.mubr.msk.f32.vlgmr.msra.gmra.mrb[0].mxu1 %vm365_vm0, %v551_v39 }
 0x1d6   : > { %v615_v41 = vpop.f32.mrb[0].mxu1 }
 0x1d7   : > { %v444_v42 = vadd.f32 %v615_v41, %v542_v40  ;;  %v438_v43 = vpop.f32.mrb[1].mxu1 }
 0x1d8   : > { %v439_v44 = vadd.f32 %v542_v40, %v438_v43 }
 0x1d9   : > { %v456_v45 = vmul.f32 %v444_v42, %v444_v42 }
 0x1da   : > { %v447_v46 = vadd.f32 %v444_v42, %v439_v44  ;;  %v455_v47 = vmul.f32 %v439_v44, %v439_v44 }
 0x1dc   : > { %v448_v48 = vrot.slane %v447_v46, 4  ;;  %v457_v49 = vadd.f32 %v456_v45, %v455_v47 }
 0x1de   : > { %v449_v50 = vadd.f32 %v448_v48, %v447_v46  ;;  %v458_v51 = vrot.slane %v457_v49, 4 }
 0x1e0   : > { %v450_v52 = vrot.slane %v449_v50, 2  ;;  %v459_v53 = vadd.f32 %v458_v51, %v457_v49 }
 0x1e2   : > { %v451_v54 = vadd.f32 %v450_v52, %v449_v50  ;;  %v460_v55 = vrot.slane %v459_v53, 2 }
 0x1e4   : > { %v452_v56 = vrot.slane %v451_v54, 1  ;;  %v461_v57 = vadd.f32 %v460_v55, %v459_v53 }
 0x1e6   : > { %v453_v58 = vadd.f32 %v452_v56, %v451_v54  ;;  %v462_v59 = vrot.slane %v461_v57, 1 }
 0x1e8   : > { %454 = vst [vmem:[%s244_s24] sm:$0x1] %v453_v58  ;;  %v463_v60 = vadd.f32 %v462_v59, %v461_v57 }
 0x1ea   : > { %464 = vst [vmem:[%s244_s24 + $0x1] sm:$0x1] %v463_v60 }
 0x1eb PF: > { %s15_s18 = sadd.s32 1, %s666_s18  }
 0x1ec   : > { %p12_p5 = scmp.ge.s32.totalorder %s15_s18, 6  }
 0x1ee   :  { %14 = sbr.rel (!%p12_p5) target bundleno = 1 (0x1), region = 73 }

// kernel: molecular_update.2
= control target key start
LH: loop header
LB: loop body
LE: loop exit
PB: predicated region body
PF: predicated region fallthrough
CT: control target
= control target key end

     0   :  { %s732_s18 = smov 0   ;;  %s822_s0 = inlined_call_operand.vmem [shape: bf16[4,16,16], index: 0, kind: input, shape index: {}]   ;;  %s823_s1 = inlined_call_operand.vmem [shape: f32[64,128], index: 1, kind: input, shape index: {}]   ;;  %s824_s2 = inlined_call_operand.vmem [shape: f32[128,128], index: 2, kind: input, shape index: {}]   ;;  %s825_s3 = inlined_call_operand.vmem [shape: f32[1,128], index: 3, kind: input, shape index: {}]   ;;  %s826_s4 = inlined_call_operand.vmem [shape: f32[64,128], index: 4, kind: output, shape index: {0}]   ;;  %s827_s5 = inlined_call_operand.vmem [shape: f32[4,2,128], index: 5, kind: output, shape index: {1}]  }
   0x1 LB: > { %s738_s19 = sadd.s32 4294967295, %s700_s18   ;;  %p568_p0 = scmp.ge.s32.totalorder %s700_s18, 1  ;;  %s700_s18 = sphi %s732_s18, %s16_s18  }
   0x2   : > { %p201_p1 = scmp.lt.s32.totalorder %s700_s18, 5 }
   0x4   : > { %p202_p2 = pnand %p568_p0, %p201_p1 }
   0x5   : > { %v265_v0 = vld [vmem:[%s824_s2] sm:$0xff] (!%p202_p2)  ;;  %v266_v1 = vld [vmem:[%s824_s2 + $0x8] sm:$0xff] (!%p202_p2)  ;;  %v267_v2 = vld [vmem:[%s824_s2 + $0x10] sm:$0xff] (!%p202_p2)  ;;  %s571_s26 = sshll.u32 (!%p202_p2), %s738_s19, 1  ;;  %p238_p4 = scmp.lt.s32.totalorder (!%p202_p2), %s738_s19, 3  ;;  %vm363_vm0 = vcmask (!%p202_p2), 130048  }
   0x6   : > { %205 = sbr.rel (%p202_p2) target bundleno = 491 (0x1eb), region = 36  ;;  %v650_v3 = vpack.c.bf16 (!%p202_p2), %v266_v1, %v265_v0  ;;  %v268_v4 = vld [vmem:[%s824_s2 + $0x18] sm:$0xff] (!%p202_p2)  ;;  %p244_p3 = scmp.lt.s32.totalorder (!%p202_p2), %s571_s26, 7  ;;  %v269_v6 = vld [vmem:[%s824_s2 + $0x20] sm:$0xff] (!%p202_p2)  ;;  %v270_v7 = vld [vmem:[%s824_s2 + $0x28] sm:$0xff] (!%p202_p2) }
   0x7   : > { %v654_v5 = vpack.c.bf16 (!%p202_p2), %v268_v4, %v267_v2  ;;  %v658_v8 = vpack.c.bf16 (!%p202_p2), %v270_v7, %v269_v6  ;;  %v271_v9 = vld [vmem:[%s824_s2 + $0x30] sm:$0xff] (!%p202_p2)  ;;  %v272_v10 = vld [vmem:[%s824_s2 + $0x38] sm:$0xff] (!%p202_p2)  ;;  %v273_v13 = vld [vmem:[%s824_s2 + $0x40] sm:$0xff] (!%p202_p2) }
   0x8   : > { %651 = vmatprep.subr.bf16.mxu0 (!%p202_p2), %v650_v3  ;;  %v662_v12 = vpack.c.bf16 (!%p202_p2), %v272_v10, %v271_v9  ;;  %v274_v14 = vld [vmem:[%s824_s2 + $0x48] sm:$0xff] (!%p202_p2)  ;;  %v275_v16 = vld [vmem:[%s824_s2 + $0x50] sm:$0xff] (!%p202_p2)  ;;  %v276_v17 = vld [vmem:[%s824_s2 + $0x58] sm:$0xff] (!%p202_p2) }
   0x9   : > { %653 = vmatpush3.bf16.msra.mxu0 (!%p202_p2), %v650_v3  ;;  %v666_v15 = vpack.c.bf16 (!%p202_p2), %v274_v14, %v273_v13  ;;  %v670_v18 = vpack.c.bf16 (!%p202_p2), %v276_v17, %v275_v16  ;;  %v277_v19 = vld [vmem:[%s824_s2 + $0x60] sm:$0xff] (!%p202_p2)  ;;  %v278_v20 = vld [vmem:[%s824_s2 + $0x68] sm:$0xff] (!%p202_p2)  ;;  %v279_v22 = vld [vmem:[%s824_s2 + $0x70] sm:$0xff] (!%p202_p2) }
   0xa   : > { %655 = vmatprep.subr.bf16.mxu0 (!%p202_p2), %v654_v5  ;;  %v674_v21 = vpack.c.bf16 (!%p202_p2), %v278_v20, %v277_v19  ;;  %v280_v23 = vld [vmem:[%s824_s2 + $0x78] sm:$0xff] (!%p202_p2)  ;;  %v576_v32 = vld [vmem:[%s825_s3] ss:$0 sm:$0xff] (!%p202_p2) }
   0xb   : > { %v678_v24 = vpack.c.bf16 (!%p202_p2), %v280_v23, %v279_v22 }
   0xd   : > { %s829_s26 = smov (!%p244_p3, %s571_s26), 7  ;;  %657 = vmatpush3.bf16.msra.mxu0 %v654_v5  ;;  %s831_s19 = smov (!%p238_p4, %s738_s19), 3 }
   0xe   : > { %s572_s8 = sshll.u32 %s829_s26, 3  ;;  %659 = vmatprep.subr.bf16.mxu0 %v658_v8  ;;  %s581_s11 = sshll.u32 %s831_s19, 3 }
   0xf   : > { %s247_s15 = scalar_lea.vmem %s823_s1, %s572_s8  ;;  %s242_s14 = scalar_lea.vmem %s822_s0, %s581_s11 }
  0x10   : > { %v263_v11 = vld [vmem:[%s247_s15] sm:$0xff]  ;;  %v264_v25 = vld [vmem:[%s247_s15 + $0x8] sm:$0xff]  ;;  %s253_s21 = scalar_lea.vmem %s826_s4, %s572_s8  ;;  %s575_s26 = sshll.u32 %s831_s19, 1 }
  0x11   : > { %640 = vmatprep.mubr.f32.mxu0 %v263_v11  ;;  %661 = vmatpush3.bf16.msra.mxu0 %v658_v8  ;;  %v583_v26 = vld [vmem:[%s242_s14] sm:$0xff]   ;;  %s258_s23 = scalar_lea.vmem %s827_s5, %s575_s26 }
  0x12   : > { %663 = vmatprep.subr.bf16.mxu0 %v662_v12  ;;  %v584_v27 = vunpack.c.l.bf16 %v583_v26  ;;  %v585_v31 = vunpack.c.h.bf16 %v583_v26 }
  0x14   : > { %647 = vmatprep.mubr.msk.f32.mxu1 %vm363_vm0, %v584_v27 }
  0x15   : > { %665 = vmatpush3.bf16.msra.mxu0 %v662_v12 }
  0x16   : > { %667 = vmatprep.subr.bf16.mxu0 %v666_v15 }
  0x19   : > { %669 = vmatpush3.bf16.msra.mxu0 %v666_v15 }
  0x1a   : > { %671 = vmatprep.subr.bf16.mxu0 %v670_v18 }
  0x1d   : > { %673 = vmatpush3.bf16.msra.mxu0 %v670_v18 }
  0x1e   : > { %675 = vmatprep.subr.bf16.mxu0 %v674_v21 }
  0x21   : > { %677 = vmatpush3.bf16.msra.mxu0 %v674_v21 }
  0x22   : > { %679 = vmatprep.subr.bf16.mxu0 %v678_v24 }
  0x25   : > { %681 = vmatpush3.bf16.msra.mxu0 %v678_v24 }
  0x28   : > { %641 = vmatmul.mubr.f32.vlgmr.msra.gmra.mrb[0].mxu0 %v264_v25 }
  0xfb   : > { %v642_v28 = vpop.f32.mrb[0].mxu0 }
  0xfc   : > { %v347_v29 = vpop.f32.mrb[1].mxu0 }
  0xfd   : > { %v682_v30 = vpack.c.bf16 %v642_v28, %v347_v29 }
  0xff   : > { %683 = vmatprep.subr.bf16.mxu1 %v682_v30 }
 0x100   : > { %685 = vmatpush3.bf16.msra.mxu1 %v682_v30 }
 0x103   : > { %648 = vmatmul.mubr.msk.f32.vlgmr.msra.gmra.mrb[0].mxu1 %vm363_vm0, %v585_v31 }
 0x1d6   : > { %v649_v33 = vpop.f32.mrb[0].mxu1 }
 0x1d7   : > { %v442_v34 = vadd.f32 %v649_v33, %v576_v32  ;;  %v436_v35 = vpop.f32.mrb[1].mxu1 }
 0x1d8   : > { %v437_v36 = vadd.f32 %v576_v32, %v436_v35 }
 0x1d9   : > { %v456_v37 = vmul.f32 %v442_v34, %v442_v34  ;;  %446 = vst [vmem:[%s253_s21 + $0x8] sm:$0xff] %v442_v34 }
 0x1da   : > { %445 = vst [vmem:[%s253_s21] sm:$0xff] %v437_v36  ;;  %v447_v38 = vadd.f32 %v442_v34, %v437_v36  ;;  %v455_v39 = vmul.f32 %v437_v36, %v437_v36 }
 0x1dc   : > { %v448_v40 = vrot.slane %v447_v38, 4  ;;  %v457_v41 = vadd.f32 %v456_v37, %v455_v39 }
 0x1de   : > { %v449_v42 = vadd.f32 %v448_v40, %v447_v38  ;;  %v458_v43 = vrot.slane %v457_v41, 4 }
 0x1e0   : > { %v450_v44 = vrot.slane %v449_v42, 2  ;;  %v459_v45 = vadd.f32 %v458_v43, %v457_v41 }
 0x1e2   : > { %v451_v46 = vadd.f32 %v450_v44, %v449_v42  ;;  %v460_v47 = vrot.slane %v459_v45, 2 }
 0x1e4   : > { %v452_v48 = vrot.slane %v451_v46, 1  ;;  %v461_v49 = vadd.f32 %v460_v47, %v459_v45 }
 0x1e6   : > { %v453_v50 = vadd.f32 %v452_v48, %v451_v46  ;;  %v462_v51 = vrot.slane %v461_v49, 1 }
 0x1e8   : > { %454 = vst [vmem:[%s258_s23] sm:$0x1] %v453_v50  ;;  %v463_v52 = vadd.f32 %v462_v51, %v461_v49 }
 0x1ea   : > { %464 = vst [vmem:[%s258_s23 + $0x1] sm:$0x1] %v463_v52 }
 0x1eb PF: > { %s16_s18 = sadd.s32 1, %s700_s18  }
 0x1ec   : > { %p13_p5 = scmp.ge.s32.totalorder %s16_s18, 6  }
 0x1ee   :  { %15 = sbr.rel (!%p13_p5) target bundleno = 1 (0x1), region = 81 }

</bundles_post_ra>
